<compile_context>
chip_gen: v7x
topology: tpu7x:2x2x1
jax: 0.10.0
libtpu: 0.0.40
codegen_flags: <defaults>
</compile_context>

<pallas_src>
import functools
import math

import jax
import jax.numpy as jnp
from jax.experimental import pallas as pl
from jax.experimental.pallas import tpu as pltpu


_MAX_BATCH_TILE = 1024       # per-grid-step batch tile for the gridded path
_GRID_FREE_MAX_BATCH = 1024  # up to this batch size: one grid-free launch


def _round_up(x: int, m: int) -> int:
    return ((x + m - 1) // m) * m


def _mlp_kernel(*refs, n_layer: int):
    """Fused Linear(+LeakyReLU) chain.

    refs = (x_ref, w1_ref, b1_ref, ..., wN_ref, bN_ref, o_ref)
    Intermediates live in vregs; no HBM round-trips between layers.
    """
    x_ref = refs[0]
    o_ref = refs[-1]
    h = x_ref[...].astype(jnp.float32)
    for i in range(n_layer):
        w = refs[1 + 2 * i][...]
        b = refs[2 + 2 * i][...].astype(jnp.float32)
        # Cast activations to the weight dtype (bf16 on v6e/v7x) only at the
        # dot; the MXU accumulates in f32.
        h = jnp.dot(h.astype(w.dtype), w, preferred_element_type=jnp.float32) + b
        if i != n_layer - 1:
            # F.leaky_relu default negative_slope = 0.01, kept in f32 (v5e-safe).
            h = jnp.where(h >= 0.0, h, 0.01 * h)
    o_ref[...] = h.astype(o_ref.dtype)


def _cost_estimate(x, params, out_dim):
    B = x.shape[0]
    flops = 0
    bytes_accessed = x.size * x.dtype.itemsize + B * out_dim * x.dtype.itemsize
    for w, b in params:
        din, dout = w.shape
        flops += 2 * B * din * dout
        bytes_accessed += w.size * w.dtype.itemsize + b.size * b.dtype.itemsize
    return pl.CostEstimate(flops=flops, transcendentals=0,
                           bytes_accessed=bytes_accessed)


def nn_forward(x, params):
    """Pallas implementation of NN.forward.

    x: (B, Din) f32.  params: list of (w[in,out], b[1,out]).  Returns (B, Dout) f32.
    """
    B, Din = x.shape
    n_layer = len(params)
    Dout = params[-1][0].shape[1]
    kernel = functools.partial(_mlp_kernel, n_layer=n_layer)

    flat_args = [x]
    for w, b in params:
        flat_args.append(w)
        flat_args.append(b)

    out_shape = jax.ShapeDtypeStruct((B, Dout), x.dtype)
    cost = _cost_estimate(x, params, Dout)

    if B <= _GRID_FREE_MAX_BATCH:
        # Single launch, straight-line body; blocks default to full arrays
        # (legal for any B/Din/Dout), everything resident in VMEM.
        return pl.pallas_call(kernel, out_shape=out_shape,
                              cost_estimate=cost)(*flat_args)

    # Gridded batch path.  Tile capped so the grid has >= 2 steps (both v7x
    # TensorCores get work); partial last tile is masked by Pallas, so the
    # batch is never rounded up.
    tile = min(_MAX_BATCH_TILE, _round_up(pl.cdiv(B, 2), 8))
    grid = (pl.cdiv(B, tile),)

    in_specs = [pl.BlockSpec((tile, Din), lambda i: (i, 0))]
    for w, b in params:
        # Grid-invariant operands: full-array blocks, always index (0, 0).
        in_specs.append(pl.BlockSpec(w.shape, lambda i: (0, 0)))
        in_specs.append(pl.BlockSpec(b.shape, lambda i: (0, 0)))
    out_specs = pl.BlockSpec((tile, Dout), lambda i: (i, 0))

    return pl.pallas_call(
        kernel,
        out_shape=out_shape,
        grid=grid,
        in_specs=in_specs,
        out_specs=out_specs,
        cost_estimate=cost,
        compiler_params=pltpu.CompilerParams(
            dimension_semantics=("parallel",)),
    )(*flat_args)


def init_params(network_size, key):
    """Deterministic init mimicking nn.Linear's default (uniform +/- 1/sqrt(fan_in)).

    Weights are stored [in, out] (transposed vs PyTorch) so the kernel does
    plain h @ w; biases are (1, out) f32.
    """
    params = []
    for i in range(len(network_size) - 1):
        fan_in, fan_out = network_size[i], network_size[i + 1]
        key, kw, kb = jax.random.split(key, 3)
        bound = 1.0 / math.sqrt(fan_in)
        w = jax.random.uniform(kw, (fan_in, fan_out), jnp.float32, -bound, bound)
        b = jax.random.uniform(kb, (1, fan_out), jnp.float32, -bound, bound)
        params.append((w, b))
    return params


def cast_weights(params, dtype):
    """Cast weights (not biases) to `dtype`; bf16 halves HBM traffic on v6e/v7x."""
    return [(w.astype(dtype), b) for w, b in params]


def nn_forward_ref(x, params):
    """Pure-JAX reference doing the same math (incl. dtype casts) as the kernel.

    With f32 params this is exactly the PyTorch NN.forward semantics.
    """
    n_layer = len(params)
    h = x.astype(jnp.float32)
    for i, (w, b) in enumerate(params):
        h = jnp.dot(h.astype(w.dtype), w,
                    preferred_element_type=jnp.float32) + b.astype(jnp.float32)
        if i != n_layer - 1:
            h = jnp.where(h >= 0.0, h, 0.01 * h)
    return h


if __name__ == "__main__":
    network_size = [32, 64, 64, 8]   # state_dim=32, two hidden layers, n_actions=8

    key = jax.random.PRNGKey(0)
    key, kp = jax.random.split(key)
    params_f32 = init_params(network_size, kp)
    params_bf16 = cast_weights(params_f32, jnp.bfloat16)

    # --- small batch: single grid-free launch, no pad/slice wrapper ops ---
    key, kx = jax.random.split(key)
    x = jax.random.normal(kx, (4, network_size[0]), jnp.float32)

    out_f32 = jax.block_until_ready(nn_forward(x, params_f32))
    ref_f32 = nn_forward_ref(x, params_f32)   # == PyTorch forward semantics
    assert out_f32.shape == (4, network_size[-1])
    assert out_f32.dtype == jnp.float32
    assert jnp.allclose(out_f32, ref_f32, atol=1e-4, rtol=1e-4), \
        "f32 small-batch mismatch vs reference"

    out_bf16 = jax.block_until_ready(nn_forward(x, params_bf16))
    ref_bf16 = nn_forward_ref(x, params_bf16)  # same bf16-weight math
    assert jnp.allclose(out_bf16, ref_bf16, atol=1e-3, rtol=1e-3), \
        "bf16 small-batch mismatch vs reference"

    # --- large batch, NOT a multiple of the tile: gridded path with a partial
    #     last tile and >= 2 "parallel" grid steps (v7x megacore) ---
    big_batch = 2500
    key, kx2 = jax.random.split(key)
    x2 = jax.random.normal(kx2, (big_batch, network_size[0]), jnp.float32)

    out2_f32 = jax.block_until_ready(nn_forward(x2, params_f32))
    ref2_f32 = nn_forward_ref(x2, params_f32)
    assert out2_f32.shape == (big_batch, network_size[-1])
    assert jnp.allclose(out2_f32, ref2_f32, atol=1e-4, rtol=1e-4), \
        "f32 big-batch mismatch vs reference"

    out2_bf16 = jax.block_until_ready(nn_forward(x2, params_bf16))
    ref2_bf16 = nn_forward_ref(x2, params_bf16)
    assert jnp.allclose(out2_bf16, ref2_bf16, atol=1e-3, rtol=1e-3), \
        "bf16 big-batch mismatch vs reference"

    print("KERNEL_OK")
</pallas_src>

<mosaic_0001>
module attributes {stable_mosaic.version = 11 : i64} {
  func.func @_mlp_kernel(%arg0: memref<4x32xf32, #tpu.memory_space<vmem>>, %arg1: memref<32x64xf32, #tpu.memory_space<vmem>>, %arg2: memref<1x64xf32, #tpu.memory_space<vmem>>, %arg3: memref<64x64xf32, #tpu.memory_space<vmem>>, %arg4: memref<1x64xf32, #tpu.memory_space<vmem>>, %arg5: memref<64x8xf32, #tpu.memory_space<vmem>>, %arg6: memref<1x8xf32, #tpu.memory_space<vmem>>, %arg7: memref<4x8xf32, #tpu.memory_space<vmem>>) attributes {dimension_semantics = [], scalar_prefetch = 0 : i64, scratch_operands = 0 : i64, tpu.core_type = #tpu.core_type<tc>} {
    %c0 = arith.constant 0 : index
    %c0_0 = arith.constant 0 : index
    %0 = vector.load %arg0[%c0, %c0_0] : memref<4x32xf32, #tpu.memory_space<vmem>>, vector<4x32xf32>
    %c0_1 = arith.constant 0 : index
    %c0_2 = arith.constant 0 : index
    %1 = vector.load %arg1[%c0_1, %c0_2] : memref<32x64xf32, #tpu.memory_space<vmem>>, vector<32x64xf32>
    %c0_3 = arith.constant 0 : index
    %c0_4 = arith.constant 0 : index
    %2 = vector.load %arg2[%c0_3, %c0_4] : memref<1x64xf32, #tpu.memory_space<vmem>>, vector<1x64xf32>
    %cst = arith.constant dense<0.000000e+00> : vector<4x64xf32>
    %3 = tpu.matmul %0, %1, %cst {dimension_numbers = #tpu.dot_dimension_numbers<[1], [0], [0], [1], [0, 0, 1, 1], [], []>} : vector<4x32xf32>, vector<32x64xf32>, vector<4x64xf32> -> vector<4x64xf32>
    %4 = vector.broadcast %2 : vector<1x64xf32> to vector<4x64xf32>
    %5 = arith.addf %3, %4 : vector<4x64xf32>
    %cst_5 = arith.constant 0.000000e+00 : f32
    %6 = vector.broadcast %cst_5 : f32 to vector<4x64xf32>
    %7 = arith.cmpf oge, %5, %6 : vector<4x64xf32>
    %cst_6 = arith.constant 0.00999999977 : f32
    %8 = vector.broadcast %cst_6 : f32 to vector<4x64xf32>
    %9 = arith.mulf %8, %5 : vector<4x64xf32>
    %10 = arith.select %7, %5, %9 : vector<4x64xi1>, vector<4x64xf32>
    %c0_7 = arith.constant 0 : index
    %c0_8 = arith.constant 0 : index
    %11 = vector.load %arg3[%c0_7, %c0_8] : memref<64x64xf32, #tpu.memory_space<vmem>>, vector<64x64xf32>
    %c0_9 = arith.constant 0 : index
    %c0_10 = arith.constant 0 : index
    %12 = vector.load %arg4[%c0_9, %c0_10] : memref<1x64xf32, #tpu.memory_space<vmem>>, vector<1x64xf32>
    %cst_11 = arith.constant dense<0.000000e+00> : vector<4x64xf32>
    %13 = tpu.matmul %10, %11, %cst_11 {dimension_numbers = #tpu.dot_dimension_numbers<[1], [0], [0], [1], [0, 0, 1, 1], [], []>} : vector<4x64xf32>, vector<64x64xf32>, vector<4x64xf32> -> vector<4x64xf32>
    %14 = vector.broadcast %12 : vector<1x64xf32> to vector<4x64xf32>
    %15 = arith.addf %13, %14 : vector<4x64xf32>
    %cst_12 = arith.constant 0.000000e+00 : f32
    %16 = vector.broadcast %cst_12 : f32 to vector<4x64xf32>
    %17 = arith.cmpf oge, %15, %16 : vector<4x64xf32>
    %cst_13 = arith.constant 0.00999999977 : f32
    %18 = vector.broadcast %cst_13 : f32 to vector<4x64xf32>
    %19 = arith.mulf %18, %15 : vector<4x64xf32>
    %20 = arith.select %17, %15, %19 : vector<4x64xi1>, vector<4x64xf32>
    %c0_14 = arith.constant 0 : index
    %c0_15 = arith.constant 0 : index
    %21 = vector.load %arg5[%c0_14, %c0_15] : memref<64x8xf32, #tpu.memory_space<vmem>>, vector<64x8xf32>
    %c0_16 = arith.constant 0 : index
    %c0_17 = arith.constant 0 : index
    %22 = vector.load %arg6[%c0_16, %c0_17] : memref<1x8xf32, #tpu.memory_space<vmem>>, vector<1x8xf32>
    %cst_18 = arith.constant dense<0.000000e+00> : vector<4x8xf32>
    %23 = tpu.matmul %20, %21, %cst_18 {dimension_numbers = #tpu.dot_dimension_numbers<[1], [0], [0], [1], [0, 0, 1, 1], [], []>} : vector<4x64xf32>, vector<64x8xf32>, vector<4x8xf32> -> vector<4x8xf32>
    %24 = vector.broadcast %22 : vector<1x8xf32> to vector<4x8xf32>
    %25 = arith.addf %23, %24 : vector<4x8xf32>
    %c0_19 = arith.constant 0 : index
    %c0_20 = arith.constant 0 : index
    %26 = vector.load %arg7[%c0_19, %c0_20] : memref<4x8xf32, #tpu.memory_space<vmem>>, vector<4x8xf32>
    tpu.vector_store %arg7[%c0_19, %c0_20], %25 {strides = array<i32>} : memref<4x8xf32, #tpu.memory_space<vmem>>, vector<4x8xf32>,
    return
  }
}

</mosaic_0001>

<bundles_post_ra>
// kernel: tpu_custom_call.1
= control target key start
LH: loop header
LB: loop body
LE: loop exit
PB: predicated region body
PF: predicated region fallthrough
CT: control target
= control target key end

     0   :  { %12 = vsyncpa [#allocation3], 0  ;;  %s624_s0 = inlined_call_operand.vmem [shape: f32[4,32], index: 0, kind: input, shape index: {}]   ;;  %s625_s1 = inlined_call_operand.hbm [shape: f32[32,64], index: 1, kind: input, shape index: {}]   ;;  %s626_s2 = inlined_call_operand.vmem [shape: f32[1,64], index: 2, kind: input, shape index: {}]   ;;  %s627_s3 = inlined_call_operand.vmem [shape: f32[64,64], index: 3, kind: input, shape index: {}]   ;;  %s628_s4 = inlined_call_operand.vmem [shape: f32[1,64], index: 4, kind: input, shape index: {}]   ;;  %s629_s5 = inlined_call_operand.vmem [shape: f32[64,8], index: 5, kind: input, shape index: {}]   ;;  %s630_s6 = inlined_call_operand.vmem [shape: f32[1,8], index: 6, kind: input, shape index: {}]   ;;  %s631_s7 = inlined_call_operand.hbm [shape: f32[4,8], index: 7, kind: output, shape index: {}]  }
   0x1   :  { %13 = vsyncpa [#allocation4], 0  ;;  %s490_s24 = smov [#allocation2]   ;;  %s442_s28 = scalar_lea.hbm %s625_s1, 512 }
   0x2   :  { %s21_s25 = sshll.u32 %s490_s24, 4  ;;  %p443_p0 = scmp.ne.s32.totalorder %s625_s1, %s442_s28  ;;  %s22_s25 = int_to_ptr.vmem [resolvable:$true] %s21_s25 }
   0x3   :  { %p446_p1 = scmp.lt.u32.totalorder %s442_s28, %s625_s1 }
   0x5   :  { %p448_p2 = pnand %p446_p1, %p443_p0 }
   0x7   :  { %451 = shalt.err (!%p448_p2)
}
   0x8   :  { %s452_s10 = scalar_lea.vmem %s22_s25, 512  ;;  %p457_p4 = scmp.lt.s32.totalorder %s22_s25, %s22_s25 }
   0x9   :  { %p453_p3 = scmp.ne.s32.totalorder %s22_s25, %s452_s10  ;;  %p458_p5 = scmp.lt.s32.totalorder %s452_s10, %s452_s10 }
   0xb   :  { %p459_p6 = por %p458_p5, %p457_p4 }
   0xd   :  { %p460_p7 = pnand %p459_p6, %p453_p3 }
   0xf   :  { %463 = shalt.err (!%p460_p7)
}
  0x10   :  { %s491_s11 = smov 128   ;;  %s492_s12 = smov 8  }
  0x11   :  { %27 = dma.hbm_to_vmem [thread:$0]  %s625_s1, 512, %s22_s25, [#allocation3], %s491_s11, %s491_s11, %s492_s12  }
  0x12   :  { %486 = dma.done.wait [#allocation3], 512  }
  0x13   :  { %487 = vsyncadd [#allocation3], 4294966784  ;;  %v493_v0 = vmov 0.0|0.0   ;;  %vm494_vm0 = vmmov 0   ;;  %v495_v1 = vmov 0.0   ;;  %v42_v2 = vld [vmem:[#allocation2] sm:$0xff] }
  0x14   :  { %405 = vmatprep.subr.bf16.mxu0 %v493_v0  ;;  %364 = vmatprep.mubr.msk.f32.mxu0 %vm494_vm0, %v495_v1  ;;  %v43_v3 = vld [vmem:[#allocation2 + $0x8] sm:$0xff]  ;;  %v44_v4 = vld [vmem:[#allocation2 + $0x10] sm:$0xff]  ;;  %v45_v6 = vld [vmem:[#allocation2 + $0x18] sm:$0xff]  ;;  %vm53_vm1 = vcmask 261120   ;;  %vm145_vm3 = vcmask 523264   ;;  %s496_s27 = smov [#allocation5]  }
  0x15   :  { %411 = vmatprep.subr.bf16.mxu1 %v493_v0  ;;  %383 = vmatprep.mubr.msk.f32.mxu1 %vm494_vm0, %v495_v1  ;;  %v406_v5 = vpack.c.bf16 %v43_v3, %v42_v2  ;;  %v130_v7 = vld [vmem:[%s627_s3] sm:$0xff]  ;;  %v131_v8 = vld [vmem:[%s627_s3 + $0x8] sm:$0xff]  ;;  %v132_v9 = vld [vmem:[%s627_s3 + $0x10] sm:$0xff]  ;;  %v409_v11 = vpack.c.bf16 %v45_v6, %v44_v4  ;;  %s318_s28 = sshll.u32 %s496_s27, 4  ;;  %vm310_vm5 = vcmask 60416   ;;  %s319_s28 = int_to_ptr.vmem [resolvable:$true] %s318_s28 }
  0x16   :  { %v133_v10 = vld [vmem:[%s627_s3 + $0x18] sm:$0xff]  ;;  %v412_v12 = vpack.c.bf16 %v131_v8, %v130_v7  ;;  %v134_v14 = vld [vmem:[%s627_s3 + $0x20] sm:$0xff]  ;;  %v135_v15 = vld [vmem:[%s627_s3 + $0x28] sm:$0xff]  ;;  %p469_p9 = scmp.lt.s32.totalorder %s319_s28, %s319_s28 }
  0x17   :  { %407 = vmatpush3.bf16.msra.mxu0 %v406_v5  ;;  %v415_v13 = vpack.c.bf16 %v133_v10, %v132_v9  ;;  %v41_v16 = vld [vmem:[%s624_s0] sm:$0xf]  ;;  %v418_v17 = vpack.c.bf16 %v135_v15, %v134_v14  ;;  %v136_v18 = vld [vmem:[%s627_s3 + $0x30] sm:$0xff]  ;;  %v137_v19 = vld [vmem:[%s627_s3 + $0x38] sm:$0xff] }
  0x18   :  { %408 = vmatprep.subr.bf16.mxu0 %v493_v0  ;;  %413 = vmatpush3.bf16.msra.mxu1 %v412_v12  ;;  %v421_v20 = vpack.c.bf16 %v137_v19, %v136_v18  ;;  %v222_v21 = vld [vmem:[%s629_s5] sm:$0xff]  ;;  %v223_v22 = vld [vmem:[%s629_s5 + $0x8] sm:$0xff]  ;;  %v224_v23 = vld [vmem:[%s629_s5 + $0x10] sm:$0xff] }
  0x19   :  { %414 = vmatprep.subr.bf16.mxu1 %v493_v0  ;;  %v424_v24 = vpack.c.bf16 %v223_v22, %v222_v21  ;;  %v225_v25 = vld [vmem:[%s629_s5 + $0x18] sm:$0xff]  ;;  %v226_v27 = vld [vmem:[%s629_s5 + $0x20] sm:$0xff]  ;;  %v227_v28 = vld [vmem:[%s629_s5 + $0x28] sm:$0xff] }
  0x1a   :  { %v427_v26 = vpack.c.bf16 %v225_v25, %v224_v23  ;;  %v430_v29 = vpack.c.bf16 %v227_v28, %v226_v27  ;;  %v327_v30 = vld [vmem:[%s626_s2] ss:$0 sm:$0xff]  ;;  %v228_v36 = vld [vmem:[%s629_s5 + $0x30] sm:$0xff]  ;;  %v229_v37 = vld [vmem:[%s629_s5 + $0x38] sm:$0xff] }
  0x1b   :  { %410 = vmatpush3.bf16.msra.mxu0 %v409_v11  ;;  %v433_v38 = vpack.c.bf16 %v229_v37, %v228_v36  ;;  %v329_v39 = vld [vmem:[%s628_s4] ss:$0 sm:$0xff]  ;;  %s464_s4 = scalar_lea.vmem %s319_s28, 64 }
  0x1c   :  { %423 = vmatprep.subr.bf16.mxu0 %v493_v0  ;;  %416 = vmatpush3.bf16.msra.mxu1 %v415_v13  ;;  %v331_v45 = vld [vmem:[%s630_s6] ss:$0 sm:$0xff]  ;;  %p465_p8 = scmp.ne.s32.totalorder %s319_s28, %s464_s4  ;;  %p470_p10 = scmp.lt.s32.totalorder %s464_s4, %s464_s4 }
  0x1d   :  { %417 = vmatprep.subr.bf16.mxu1 %v493_v0 }
  0x1e   :  { %365 = vmatmul.mubr.msk.f32.vlgmr.msra.gmra.mrb[0].mxu0 %vm53_vm1, %v41_v16  ;;  %p471_p11 = por %p470_p10, %p469_p9 }
  0x1f   :  { %402 = vmatprep.mubr.msk.f32.mxu0 %vm494_vm0, %v495_v1  ;;  %425 = vmatpush3.bf16.msra.mxu0 %v424_v24 }
  0x20   :  { %419 = vmatpush3.bf16.msra.mxu1 %v418_v17  ;;  %426 = vmatprep.subr.bf16.mxu0 %v493_v0  ;;  %p472_p12 = pnand %p471_p11, %p465_p8 }
  0x21   :  { %420 = vmatprep.subr.bf16.mxu1 %v493_v0 }
  0x23   :  { %428 = vmatpush3.bf16.msra.mxu0 %v427_v26 }
  0x24   :  { %422 = vmatpush3.bf16.msra.mxu1 %v421_v20  ;;  %429 = vmatprep.subr.bf16.mxu0 %v493_v0 }
  0x27   :  { %431 = vmatpush3.bf16.msra.mxu0 %v430_v29 }
  0x28   :  { %432 = vmatprep.subr.bf16.mxu0 %v493_v0 }
  0x2b   :  { %434 = vmatpush3.bf16.msra.mxu0 %v433_v38 }
  0xf1   :  { %v123_v31 = vpop.f32.mrb[0].mxu0 }
  0xf2   :  { %v124_v32 = vadd.f32 %v327_v30, %v123_v31  ;;  %v366_v33 = vpop.f32.mrb[1].mxu0 }
  0xf4   :  { %vm127_vm2 = vcmp.ge.f32.partialorder %v124_v32, 0.0  ;;  %v128_v34 = vmul.f32 0.01, %v124_v32 }
  0xf6   :  { %v129_v35 = vsel %vm127_vm2, %v124_v32, %v128_v34 }
  0xf7   :  { %384 = vmatmul.mubr.msk.f32.vlgmr.msra.gmra.mrb[0].mxu1 %vm145_vm3, %v129_v35 }
 0x1ca   :  { %v215_v40 = vpop.f32.mrb[0].mxu1 }
 0x1cb   :  { %v216_v41 = vadd.f32 %v329_v39, %v215_v40  ;;  %v385_v42 = vpop.f32.mrb[1].mxu1 }
 0x1cd   :  { %vm219_vm4 = vcmp.ge.f32.partialorder %v216_v41, 0.0  ;;  %v220_v43 = vmul.f32 0.01, %v216_v41 }
 0x1cf   :  { %v221_v44 = vsel %vm219_vm4, %v216_v41, %v220_v43 }
 0x1d0   :  { %403 = vmatmul.mubr.msk.f32.vlgmr.msra.gmra.mrb[2].mxu0 %vm145_vm3, %v221_v44 }
 0x2a3   :  { %v306_v46 = vpop.f32.mrb[2].mxu0 }
 0x2a4   :  { %v307_v47 = vadd.f32 %v331_v45, %v306_v46  ;;  %v404_v48 = vpop.f32.mrb[3].mxu0 }
 0x2a6   :  { %311 = vst.msk [vmem:[#allocation5] sm:$0xf] %vm310_vm5, %v307_v47 }
 0x2a7   :  { %475 = shalt.err (!%p472_p12)
}
 0x2a8   :  { %s476_s30 = scalar_lea.hbm %s631_s7, 64 }
 0x2a9   :  { %p477_p13 = scmp.ne.s32.totalorder %s631_s7, %s476_s30  ;;  %p480_p0 = scmp.lt.u32.totalorder %s476_s30, %s631_s7 }
 0x2ab   :  { %p482_p1 = pnand %p480_p0, %p477_p13 }
 0x2ad   :  { %485 = shalt.err (!%p482_p1)
}
 0x2ae   :  { %321 = dma.vmem_to_hbm [thread:$0]  %s319_s28, 64, %s631_s7, [#allocation4]  }
 0x2af   :  { %488 = dma.done.wait [#allocation4], 64  }
 0x2b0   :  { %489 = vsyncadd [#allocation4], 4294967232 }
 0x2b1   :  { %325 = vsyncpa [#allocation3], 1 }
 0x2b2   :  { %326 = vsyncpa [#allocation4], 1 }

</bundles_post_ra>
